<compile_context>
chip_gen: v5e
topology: v5e:2x2
jax: 0.10.0
libtpu: 0.0.40
codegen_flags: <defaults>
</compile_context>

<pallas_src>
import functools
import math

import jax
import jax.numpy as jnp
from jax.experimental import pallas as pl
from jax.experimental.pallas import tpu as pltpu


def _round_up(a: int, m: int) -> int:
    return ((a + m - 1) // m) * m


def encoder_kernel(xt_ref, w1_ref, b1_ref, pool_ref, w2_ref, b2_ref, o_ref,
                   *, inv_len: float):
    """Fused conv(im2col GEMM) -> bias -> ReLU -> mean-pool GEMM -> linear.

    xt_ref   : (KC, rows)   transposed im2col stream (bf16, rows on lanes)
    w1_ref   : (Hp, KC)     conv weight, columns in (k, c) order (bf16)
    b1_ref   : (Hp, 1)      conv bias (f32, zero-padded)
    pool_ref : (Bt, rows)   0/1 batch-group pooling matrix (bf16)
    w2_ref   : (Hp, NCp)    classifier weight (bf16, zero-padded)
    b2_ref   : (1, NCp)     classifier bias (f32, zero-padded)
    o_ref    : (Bt, NCp)    logits for this batch tile (f32), lane-dense store
    """
    # Conv1d(kernel=5, padding=2) as one lane-dense GEMM over the K*C contraction.
    conv = jnp.dot(w1_ref[...], xt_ref[...],
                   preferred_element_type=jnp.float32)            # (Hp, rows)
    conv = jnp.maximum(conv + b1_ref[...], 0.0)                   # bias + ReLU

    # AdaptiveAvgPool1d(1): sum each batch group of L lane-columns via a 0/1
    # pooling GEMM ('bk,hk->bh', contraction over lanes of both operands),
    # then scale by 1/L in f32.  No reshapes or transposes required.
    feat = jax.lax.dot_general(
        pool_ref[...], conv.astype(jnp.bfloat16),
        dimension_numbers=(((1,), (1,)), ((), ())),
        preferred_element_type=jnp.float32) * inv_len             # (Bt, Hp)

    # Linear classifier; bf16 operands, f32 accumulate, lane-dense store.
    logits = jnp.dot(feat.astype(jnp.bfloat16), w2_ref[...],
                     preferred_element_type=jnp.float32) + b2_ref[...]
    o_ref[...] = logits.astype(o_ref.dtype)


def simple_encoder_forward(x, w1, b1, w2, b2, *, block_b=None):
    """x: (B, C, L) f32 (PyTorch NCL layout).
    w1: (H, C, K) conv weight, b1: (H,), w2: (NC, H) linear weight, b2: (NC,).
    Returns logits (B, NC) f32."""
    B, C, L = x.shape
    H, _, K = w1.shape
    NC = w2.shape[0]
    pad = (K - 1) // 2
    LANE, SUB = 128, 8

    Hp = _round_up(H, LANE)
    NCp = _round_up(NC, LANE)
    KC = K * C

    # --- batch-tile sizing -------------------------------------------------
    # block_b granularity: block_b*L must be a multiple of 128 (lane-dense xT
    # block) and block_b a multiple of 8 (output block sublanes).
    unit = LANE // math.gcd(L, LANE)
    unit = unit * SUB // math.gcd(unit, SUB)           # lcm(unit, 8)

    if block_b is None:
        # Cap block_b so the dense 0/1 pooling GEMM (~ block_b^2*L*Hp MACs)
        # stays a small multiple of the conv GEMM (~ block_b*L*KC*Hp MACs)
        # while keeping large lane-dense row blocks per grid step.
        bb_cap = max(unit, (128 // unit) * unit)
        half_b = _round_up(max(1, (B + 1) // 2), unit)  # aim for >= 2 steps
        block_b = min(bb_cap, half_b)
    block_b = max(unit, _round_up(block_b, unit))

    # VMEM guard: keep the streamed x block under ~8 MiB per buffer
    # (comfortable on v7x's 64 MiB as well as v5e/v6e).
    max_rows = (8 * 1024 * 1024) // (KC * 2)
    while block_b > unit and block_b * L > max_rows:
        block_b -= unit

    rows = block_b * L
    num_steps = max(1, -(-B // block_b))
    if B > 1:
        num_steps = max(num_steps, 2)      # give both v7x TensorCores work
    Bp = num_steps * block_b

    # --- wrapper glue: layout + transposed im2col (lane-dense stream) -------
    xb = jnp.pad(x, ((0, Bp - B), (0, 0), (0, 0)))             # (Bp, C, L)
    x_padL = jnp.pad(xb, ((0, 0), (0, 0), (pad, pad)))         # (Bp, C, L+2p)
    win = jnp.arange(L)[:, None] + jnp.arange(K)[None, :]       # (L, K)
    x_win = x_padL[:, :, win]                                   # (Bp, C, L, K)
    x_wt = jnp.transpose(x_win, (3, 1, 0, 2)).reshape(KC, Bp * L)
    x_wt = x_wt.astype(jnp.bfloat16)                            # (KC, Bp*L)

    # conv weight -> (Hp, KC), columns in (k, c) order matching x_wt rows.
    w1_mat = jnp.transpose(w1, (0, 2, 1)).reshape(H, KC)
    w1_mat = jnp.pad(w1_mat, ((0, Hp - H), (0, 0))).astype(jnp.bfloat16)
    b1_col = jnp.pad(b1.reshape(H, 1), ((0, Hp - H), (0, 0))).astype(jnp.float32)

    # 0/1 pooling matrix: pool[b, r] = 1 iff column r belongs to batch slot b.
    pool_t = (jnp.arange(block_b)[:, None] ==
              (jnp.arange(rows) // L)[None, :]).astype(jnp.bfloat16)

    w2_mat = jnp.pad(jnp.transpose(w2),
                     ((0, Hp - H), (0, NCp - NC))).astype(jnp.bfloat16)
    b2_row = jnp.pad(b2.reshape(1, NC),
                     ((0, 0), (0, NCp - NC))).astype(jnp.float32)

    grid = (num_steps,)
    flops = 2 * num_steps * (Hp * KC * rows
                             + block_b * rows * Hp
                             + block_b * Hp * NCp)
    bytes_accessed = (x_wt.size * 2
                      + (w1_mat.size + w2_mat.size + pool_t.size) * 2
                      + (b1_col.size + b2_row.size) * 4
                      + Bp * NCp * 4)
    cost = pl.CostEstimate(flops=int(flops), transcendentals=0,
                           bytes_accessed=int(bytes_accessed))

    out = pl.pallas_call(
        functools.partial(encoder_kernel, inv_len=1.0 / L),
        out_shape=jax.ShapeDtypeStruct((Bp, NCp), jnp.float32),
        grid=grid,
        in_specs=[
            pl.BlockSpec((KC, rows), lambda i: (0, i)),        # lane-dense stream
            pl.BlockSpec((Hp, KC), lambda i: (0, 0)),          # conv weight
            pl.BlockSpec((Hp, 1), lambda i: (0, 0)),           # conv bias
            pl.BlockSpec((block_b, rows), lambda i: (0, 0)),   # pooling matrix
            pl.BlockSpec((Hp, NCp), lambda i: (0, 0)),         # classifier weight
            pl.BlockSpec((1, NCp), lambda i: (0, 0)),          # classifier bias
        ],
        out_specs=pl.BlockSpec((block_b, NCp), lambda i: (i, 0)),
        compiler_params=pltpu.CompilerParams(
            dimension_semantics=("parallel",),
            vmem_limit_bytes=48 * 1024 * 1024),
        cost_estimate=cost,
    )(x_wt, w1_mat, b1_col, pool_t, w2_mat, b2_row)

    return out[:B, :NC]


def _reference_forward(x, w1, b1, w2, b2):
    """Plain-JAX f32 reference matching the PyTorch forward."""
    conv = jax.lax.conv_general_dilated(
        x, w1, window_strides=(1,), padding=((2, 2),),
        dimension_numbers=("NCW", "OIW", "NCW"))
    conv = conv + b1[None, :, None]
    conv = jnp.maximum(conv, 0.0)
    feat = jnp.mean(conv, axis=-1)                              # (B, H)
    return feat @ w2.T + b2[None, :]


if __name__ == "__main__":
    # Small shapes consistent with the module: (B, C, L) input.
    B, C, L = 2, 4, 16
    H, NC, K = 32, 2, 5

    key = jax.random.PRNGKey(0)
    kx, kw1, kb1, kw2, kb2 = jax.random.split(key, 5)

    x = jax.random.normal(kx, (B, C, L), dtype=jnp.float32)
    # Deterministic synthetic parameters (shapes match nn.Conv1d / nn.Linear).
    w1 = jax.random.normal(kw1, (H, C, K), dtype=jnp.float32) * 0.1
    b1 = jax.random.normal(kb1, (H,), dtype=jnp.float32) * 0.1
    w2 = jax.random.normal(kw2, (NC, H), dtype=jnp.float32) * 0.1
    b2 = jax.random.normal(kb2, (NC,), dtype=jnp.float32) * 0.1

    logits = simple_encoder_forward(x, w1, b1, w2, b2)
    jax.block_until_ready(logits)

    ref = _reference_forward(x, w1, b1, w2, b2)
    assert logits.shape == (B, NC)
    # Loose tolerance because conv / pooling / classifier operands travel as
    # bf16 (all GEMMs accumulate in f32).
    assert jnp.allclose(logits, ref, atol=3e-2, rtol=3e-2), (
        f"mismatch: {logits} vs {ref}")

    print("KERNEL_OK")
</pallas_src>

<mosaic_0001>
module attributes {stable_mosaic.version = 11 : i64} {
  func.func @encoder_kernel(%arg0: i32, %arg1: memref<20x128xbf16, #tpu.memory_space<vmem>>, %arg2: memref<128x20xbf16, #tpu.memory_space<vmem>>, %arg3: memref<128x1xf32, #tpu.memory_space<vmem>>, %arg4: memref<8x128xbf16, #tpu.memory_space<vmem>>, %arg5: memref<128x128xbf16, #tpu.memory_space<vmem>>, %arg6: memref<1x128xf32, #tpu.memory_space<vmem>>, %arg7: memref<8x128xf32, #tpu.memory_space<vmem>>) attributes {dimension_semantics = [#tpu.dimension_semantics<parallel>], iteration_bounds = array<i64: 2>, scalar_prefetch = 0 : i64, scratch_operands = 0 : i64, tpu.core_type = #tpu.core_type<tc>, window_params = [{transform_indices = @transform_0, window_bounds = array<i64: 20, 128>}, {pipeline_mode = #tpu.pipeline_mode<synchronous>, transform_indices = @transform_1, window_bounds = array<i64: 128, 20>}, {pipeline_mode = #tpu.pipeline_mode<synchronous>, transform_indices = @transform_2, window_bounds = array<i64: 128, 1>}, {pipeline_mode = #tpu.pipeline_mode<synchronous>, transform_indices = @transform_3, window_bounds = array<i64: 8, 128>}, {pipeline_mode = #tpu.pipeline_mode<synchronous>, transform_indices = @transform_4, window_bounds = array<i64: 128, 128>}, {pipeline_mode = #tpu.pipeline_mode<synchronous>, transform_indices = @transform_5, window_bounds = array<i64: 1, 128>}, {transform_indices = @transform_6, window_bounds = array<i64: 8, 128>}]} {
    %c0 = arith.constant 0 : index
    %c0_0 = arith.constant 0 : index
    %0 = vector.load %arg2[%c0, %c0_0] : memref<128x20xbf16, #tpu.memory_space<vmem>>, vector<128x20xbf16>
    %c0_1 = arith.constant 0 : index
    %c0_2 = arith.constant 0 : index
    %1 = vector.load %arg1[%c0_1, %c0_2] : memref<20x128xbf16, #tpu.memory_space<vmem>>, vector<20x128xbf16>
    %cst = arith.constant dense<0.000000e+00> : vector<128x128xf32>
    %2 = tpu.matmul %0, %1, %cst {dimension_numbers = #tpu.dot_dimension_numbers<[1], [0], [0], [1], [0, 0, 1, 1], [], []>} : vector<128x20xbf16>, vector<20x128xbf16>, vector<128x128xf32> -> vector<128x128xf32>
    %c0_3 = arith.constant 0 : index
    %c0_4 = arith.constant 0 : index
    %3 = vector.load %arg3[%c0_3, %c0_4] : memref<128x1xf32, #tpu.memory_space<vmem>>, vector<128x1xf32>
    %4 = vector.broadcast %3 : vector<128x1xf32> to vector<128x128xf32>
    %5 = arith.addf %2, %4 : vector<128x128xf32>
    %cst_5 = arith.constant 0.000000e+00 : f32
    %6 = vector.broadcast %cst_5 : f32 to vector<128x128xf32>
    %7 = arith.maximumf %5, %6 : vector<128x128xf32>
    %c0_6 = arith.constant 0 : index
    %c0_7 = arith.constant 0 : index
    %8 = vector.load %arg4[%c0_6, %c0_7] : memref<8x128xbf16, #tpu.memory_space<vmem>>, vector<8x128xbf16>
    %9 = arith.truncf %7 : vector<128x128xf32> to vector<128x128xbf16>
    %cst_8 = arith.constant dense<0.000000e+00> : vector<8x128xf32>
    %10 = tpu.matmul %8, %9, %cst_8 {dimension_numbers = #tpu.dot_dimension_numbers<[1], [1], [0], [0], [0, 0, 1, 0], [], []>} : vector<8x128xbf16>, vector<128x128xbf16>, vector<8x128xf32> -> vector<8x128xf32>
    %cst_9 = arith.constant 6.250000e-02 : f32
    %11 = vector.broadcast %cst_9 : f32 to vector<8x128xf32>
    %12 = arith.mulf %10, %11 : vector<8x128xf32>
    %13 = arith.truncf %12 : vector<8x128xf32> to vector<8x128xbf16>
    %c0_10 = arith.constant 0 : index
    %c0_11 = arith.constant 0 : index
    %14 = vector.load %arg5[%c0_10, %c0_11] : memref<128x128xbf16, #tpu.memory_space<vmem>>, vector<128x128xbf16>
    %cst_12 = arith.constant dense<0.000000e+00> : vector<8x128xf32>
    %15 = tpu.matmul %13, %14, %cst_12 {dimension_numbers = #tpu.dot_dimension_numbers<[1], [0], [0], [1], [0, 0, 1, 1], [], []>} : vector<8x128xbf16>, vector<128x128xbf16>, vector<8x128xf32> -> vector<8x128xf32>
    %c0_13 = arith.constant 0 : index
    %c0_14 = arith.constant 0 : index
    %16 = vector.load %arg6[%c0_13, %c0_14] : memref<1x128xf32, #tpu.memory_space<vmem>>, vector<1x128xf32>
    %17 = vector.broadcast %16 : vector<1x128xf32> to vector<8x128xf32>
    %18 = arith.addf %15, %17 : vector<8x128xf32>
    %c0_15 = arith.constant 0 : index
    %c0_16 = arith.constant 0 : index
    %19 = vector.load %arg7[%c0_15, %c0_16] : memref<8x128xf32, #tpu.memory_space<vmem>>, vector<8x128xf32>
    tpu.vector_store %arg7[%c0_15, %c0_16], %18 {strides = array<i32>} : memref<8x128xf32, #tpu.memory_space<vmem>>, vector<8x128xf32>,
    return
  }
  func.func @transform_0(%arg0: i32) -> (i32, i32) {
    %c0_i32 = arith.constant 0 : i32
    %c0_i32_0 = arith.constant 0 : i32
    return %c0_i32, %arg0 : i32, i32
  }
  func.func @transform_1(%arg0: i32) -> (i32, i32) {
    %c0_i32 = arith.constant 0 : i32
    %c0_i32_0 = arith.constant 0 : i32
    %c0_i32_1 = arith.constant 0 : i32
    return %c0_i32, %c0_i32_0 : i32, i32
  }
  func.func @transform_2(%arg0: i32) -> (i32, i32) {
    %c0_i32 = arith.constant 0 : i32
    %c0_i32_0 = arith.constant 0 : i32
    %c0_i32_1 = arith.constant 0 : i32
    return %c0_i32, %c0_i32_0 : i32, i32
  }
  func.func @transform_3(%arg0: i32) -> (i32, i32) {
    %c0_i32 = arith.constant 0 : i32
    %c0_i32_0 = arith.constant 0 : i32
    %c0_i32_1 = arith.constant 0 : i32
    return %c0_i32, %c0_i32_0 : i32, i32
  }
  func.func @transform_4(%arg0: i32) -> (i32, i32) {
    %c0_i32 = arith.constant 0 : i32
    %c0_i32_0 = arith.constant 0 : i32
    %c0_i32_1 = arith.constant 0 : i32
    return %c0_i32, %c0_i32_0 : i32, i32
  }
  func.func @transform_5(%arg0: i32) -> (i32, i32) {
    %c0_i32 = arith.constant 0 : i32
    %c0_i32_0 = arith.constant 0 : i32
    %c0_i32_1 = arith.constant 0 : i32
    return %c0_i32, %c0_i32_0 : i32, i32
  }
  func.func @transform_6(%arg0: i32) -> (i32, i32) {
    %c0_i32 = arith.constant 0 : i32
    %c0_i32_0 = arith.constant 0 : i32
    return %arg0, %c0_i32 : i32, i32
  }
}

</mosaic_0001>

<bundles_post_ra>
// kernel: tpu_custom_call.1
= control target key start
LH: loop header
LB: loop body
LE: loop exit
PB: predicated region body
PF: predicated region fallthrough
CT: control target
= control target key end

     0   :  { %11 = vsyncpa [#allocation4], 0  ;;  %s1209_s0 = inlined_call_operand.vmem [shape: bf16[20,256], index: 0, kind: input, shape index: {}]   ;;  %s1210_s1 = inlined_call_operand.vmem [shape: bf16[128,20], index: 1, kind: input, shape index: {}]   ;;  %s1211_s2 = inlined_call_operand.vmem [shape: f32[128,1], index: 2, kind: input, shape index: {}]   ;;  %s1212_s3 = inlined_call_operand.vmem [shape: bf16[8,128], index: 3, kind: input, shape index: {}]   ;;  %s1213_s4 = inlined_call_operand.vmem [shape: bf16[128,128], index: 4, kind: input, shape index: {}]   ;;  %s1214_s5 = inlined_call_operand.vmem [shape: f32[1,128], index: 5, kind: input, shape index: {}]   ;;  %s1215_s6 = inlined_call_operand.hbm [shape: f32[16,128], index: 6, kind: output, shape index: {}]  }
   0x1   :  { %13 = vsyncpa [#allocation4 + $0x1], 0  ;;  %s998_s21 = smov 0   ;;  %s1000_s22 = smov 0  }
   0x2   :  { %s1002_s23 = smov 0   ;;  %s1004_s24 = smov 0  }
   0x3 LB: > { %s746_s25 = sadd.s32 4294967295, %s960_s24   ;;  %s747_s26 = sadd.s32 4294967294, %s960_s24   ;;  %s960_s24 = sphi %s1004_s24, %s1221_s24   ;;  %s956_s23 = sphi %s1002_s23, %s1220_s23   ;;  %s952_s22 = sphi %s1000_s22, %s1219_s22   ;;  %s948_s21 = sphi %s998_s21, %s1218_s21  }
   0x4   : > { %s1021_s27 = sadd.s32 1, %s960_s24   ;;  %s26_s28 = sadd.s32 1, %s956_s23 }
   0x5   : > { %s23_s29 = ssub.s32 %s960_s24, %s1021_s27  ;;  %p33_p0 = scmp.ne.s32.totalorder %s956_s23, %s952_s22 }
   0x6   : > { %p24_p1 = scmp.eq.s32.totalorder %s23_s29, 0  ;;  %p34_p2 = scmp.eq.s32.totalorder %s960_s24, 0 }
   0x7   : > { %p168_p3 = scmp.eq.s32.totalorder %s746_s25, 1  ;;  %p173_p4 = scmp.ne.s32.totalorder %s952_s22, %s948_s21 }
   0x8   : > { %s1034_s30 = scalar_select %p24_p1, %s956_s23, %s26_s28  }
   0x9   : > { %p35_p5 = por %p34_p2, %p33_p0  ;;  %p1036_p6 = por %p168_p3, %p33_p0 }
   0xa   : > { %p174_p7 = scmp.eq.s32.totalorder %s747_s26, 1  ;;  %p749_p9 = scmp.ge.s32.totalorder %s960_s24, 2 }
   0xc   : > { %p1040_p8 = por %p174_p7, %p173_p4  ;;  %205 = sbr.rel (%p749_p9) target bundleno = 25 (0x19), region = 36 }
  0x11   : > { %208 = sbr.rel (!%p35_p5) target bundleno = 25 (0x19), region = 40  ;;  %s210_s9 = sand.u32 (%p35_p5), 1, %s956_s23  }
  0x12   : > { %s750_s10 = sshll.u32 (%p35_p5), %s960_s24, 2  ;;  %s852_s11 = smul.u32 (%p35_p5), 12, %s210_s9 }
  0x13   : > { %s214_s14 = scalar_lea.vmem (%p35_p5), %s1209_s0, %s750_s10 }
  0x14   : > { %v231_v0 = vld [vmem:[%s214_s14] sm:$0xf] (%p35_p5)  ;;  %v233_v1 = vld [vmem:[%s214_s14 + $0x8] sm:$0xf] (%p35_p5)  ;;  %v235_v2 = vld [vmem:[%s214_s14 + $0x10] sm:$0xf] (%p35_p5) }
  0x15   : > { %s212_s15 = scalar_lea.vmem (%p35_p5), [#allocation2], %s852_s11 }
  0x16   : > { %232 = vst [vmem:[%s212_s15] sm:$0xf] %v231_v0 }
  0x17   : > { %234 = vst [vmem:[%s212_s15 + $0x4] sm:$0xf] %v233_v1 }
  0x18   : > { %236 = vst [vmem:[%s212_s15 + $0x8] sm:$0xf] %v235_v2 }
  0x19 PF: > { %p751_p10 = scmp.ge.s32.totalorder %s960_s24, 1  ;;  %p265_p11 = scmp.lt.s32.totalorder %s960_s24, 3 }
  0x1b   : > { %p266_p12 = pnand %p751_p10, %p265_p11 }
  0x1c   : > { %s1055_s16 = sand.u32 (!%p266_p12), 1, %s952_s22   ;;  %s830_s14 = sshll.u32 (!%p266_p12), %s746_s25, 3 }
  0x1d   : > { %269 = sbr.rel (%p266_p12) target bundleno = 575 (0x23f), region = 81  ;;  %s752_s15 = sshll.u32 (!%p266_p12), %s1055_s16, 3 }
  0x1e   : > { %s853_s17 = smul.u32 (!%p266_p12), 12, %s1055_s16  ;;  %s677_s19 = scalar_lea.hbm (!%p266_p12), %s1215_s6, %s830_s14 }
  0x1f   : > { %s681_s9 = sshll.u32 (!%p266_p12), %s677_s19, 4  ;;  %s667_s10 = scalar_lea.sflag (!%p266_p12), [#allocation4], %s1055_s16  ;;  %s682_s9 = int_to_ptr.hbm [resolvable:$true] %s681_s9 }
  0x20   : > { %s274_s28 = scalar_lea.vmem (!%p266_p12), [#allocation2], %s853_s17  ;;  %s912_s25 = sshra.s32 (!%p266_p12), %s682_s9, 4  ;;  %s913_s25 = int_to_ptr.hbm [resolvable:$true] %s912_s25 }
  0x21   : > { %s914_s11 = scalar_lea.hbm (!%p266_p12), %s913_s25, 8  ;;  %s918_s14 = scalar_lea.hbm (!%p266_p12), %s1215_s6, 16 }
  0x22   : > { %v962_v3 = vmov 0   ;;  %v335_v4 = vld [vmem:[%s1211_s2 + $0x70] sm:$0xff]  ;;  %v333_v5 = vld [vmem:[%s1211_s2 + $0x60] sm:$0xff]  ;;  %vm491_vm0 = vcmask 1041408   ;;  %v336_v9 = vld [vmem:[%s1211_s2 + $0x78] sm:$0xff]  ;;  %vm466_vm1 = vcmask 162816   ;;  %p915_p13 = scmp.ne.s32.totalorder %s913_s25, %s914_s11  ;;  %p919_p2 = scmp.lt.s32.totalorder %s913_s25, %s1215_s6 }
  0x23   : > { %894 = vset.pattern.permute.xlu0 %v962_v3  ;;  %895 = vset.pattern.permute.xlu1 %v962_v3  ;;  %v320_v6 = vld [vmem:[%s274_s28 + $0x8] sm:$0x3]  ;;  %v841_v12 = vld [vmem:[%s274_s28] sm:$0xff]  ;;  %v328_v18 = vld [vmem:[%s1211_s2 + $0x38] sm:$0xff]  ;;  %s300_s28 = scalar_lea.vmem [#allocation3], %s752_s15  ;;  %p920_p3 = scmp.lt.s32.totalorder %s918_s14, %s914_s11 }
  0x24   : > { %409 = vperm.xlu0 %894, %v335_v4   ;;  %399 = vperm.xlu1 %895, %v333_v5   ;;  %v462_v7 = vunpack.c.l.b16 %v320_v6  ;;  %v334_v10 = vld [vmem:[%s1211_s2 + $0x68] sm:$0xff]  ;;  %v833_v13 = vld [vmem:[%s1210_s1] sm:$0xff]  ;;  %v331_v17 = vld [vmem:[%s1211_s2 + $0x50] sm:$0xff]  ;;  %s679_s29 = sshll.u32 %s300_s28, 4  ;;  %p916_p0 = pnand %p915_p13, %p1036_p6  ;;  %s680_s29 = int_to_ptr.vmem [resolvable:$true] %s679_s29 }
  0x25   : > { %896 = vset.pattern.permute.xlu2 %v962_v3  ;;  %v837_v14 = vld [vmem:[%s1210_s1 + $0x20] sm:$0xff]  ;;  %v330_v16 = vld [vmem:[%s1211_s2 + $0x48] sm:$0xff]  ;;  %v323_v21 = vld [vmem:[%s1211_s2 + $0x10] sm:$0xff]  ;;  %p921_p4 = por %p920_p3, %p919_p2 }
  0x26   : > { %v464_v8 = vpack.c.b16 %v462_v7, %v462_v7  ;;  %v329_v15 = vld [vmem:[%s1211_s2 + $0x40] sm:$0xff]  ;;  %389 = vperm.xlu2 %896, %v331_v17   ;;  %v834_v19 = vld [vmem:[%s1210_s1 + $0x8] sm:$0xff]  ;;  %v332_v22 = vld [vmem:[%s1211_s2 + $0x58] sm:$0xff]  ;;  %p917_p1 = pneg %p916_p0 }
  0x27   : > { %v838_v20 = vld [vmem:[%s1210_s1 + $0x28] sm:$0xff]  ;;  %v325_v23 = vld [vmem:[%s1211_s2 + $0x20] sm:$0xff]  ;;  %v327_v24 = vld [vmem:[%s1211_s2 + $0x30] sm:$0xff] }
  0x28   : > { %v493_v11 = vsel %vm491_vm0, %v464_v8, 0  ;;  %v322_v25 = vld [vmem:[%s1211_s2 + $0x8] sm:$0xff]  ;;  %v324_v26 = vld [vmem:[%s1211_s2 + $0x18] sm:$0xff]  ;;  %v835_v27 = vld [vmem:[%s1210_s1 + $0x10] sm:$0xff]  ;;  %p922_p5 = pnand %p921_p4, %p917_p1 }
  0x29   : > { %501 = vmatpush.bf16.msra.mxu0 %v493_v11  ;;  %850 = vmatpush.bf16.msra.mxu3 %v493_v11  ;;  %v839_v28 = vld [vmem:[%s1210_s1 + $0x30] sm:$0xff]  ;;  %v326_v29 = vld [vmem:[%s1211_s2 + $0x28] sm:$0xff]  ;;  %v321_v30 = vld [vmem:[%s1211_s2] sm:$0xff] }
  0x2a   : > { %v836_v31 = vld [vmem:[%s1210_s1 + $0x18] sm:$0xff] }
  0x2b   : > { %v840_v32 = vld [vmem:[%s1210_s1 + $0x38] sm:$0xff] }
  0x2c   : > { %414 = vperm.xlu0 %894, %v336_v9   ;;  %404 = vperm.xlu1 %895, %v334_v10  }
  0x2d   : > { %502 = vmatpush.bf16.msra.mxu0 %v841_v12  ;;  %851 = vmatpush.bf16.msra.mxu3 %v841_v12 }
  0x2e   : > { %394 = vperm.xlu2 %896, %v332_v22  }
  0x30   : > { %789 = vmatmul.msk.bf16.vlgmr.msra.gmra.mxu0 %vm466_vm1, %v833_v13  ;;  %793 = vmatmul.msk.bf16.vlgmr.msra.gmra.mxu3 %vm466_vm1, %v837_v14 }
  0x34   : > { %379 = vperm.xlu0 %894, %v329_v15   ;;  %384 = vperm.xlu1 %895, %v330_v16  }
  0x36   : > { %369 = vperm.xlu2 %896, %v327_v24  }
  0x3c   : > { %374 = vperm.xlu0 %894, %v328_v18   ;;  %359 = vperm.xlu1 %895, %v325_v23  }
  0x3e   : > { %364 = vperm.xlu2 %896, %v326_v29  }
  0x40   : > { %790 = vmatmul.msk.bf16.gmra.mxu0 %vm466_vm1, %v834_v19  ;;  %794 = vmatmul.msk.bf16.gmra.mxu3 %vm466_vm1, %v838_v20 }
  0x44   : > { %349 = vperm.xlu0 %894, %v323_v21   ;;  %354 = vperm.xlu1 %895, %v324_v26  }
  0x46   : > { %339 = vperm.xlu2 %896, %v321_v30  }
  0x4c   : > { %344 = vperm.xlu0 %894, %v322_v25  }
  0x50   : > { %791 = vmatmul.msk.bf16.gmra.mxu0 %vm466_vm1, %v835_v27  ;;  %795 = vmatmul.msk.bf16.gmra.mxu3 %vm466_vm1, %v839_v28 }
  0x60   : > { %792 = vmatmul.msk.bf16.gmra.mxu0 %vm466_vm1, %v836_v31  ;;  %796 = vmatmul.msk.bf16.gmra.mxu3 %vm466_vm1, %v840_v32  ;;  %v849_v32 = vld [vmem:[%s1213_s4 + $0x38] sm:$0xff] }
  0x61   : > { %652 = vmatpush.bf16.msra.mxu2 %v849_v32 }
  0x80   : > { %v390_v33 = vpop.permute.xlu2 %389 }
  0x88   : > { %v395_v35 = vpop.permute.xlu2 %394 }
  0x90   : > { %v370_v37 = vpop.permute.xlu2 %369 }
  0x96   : > { %v410_v34 = vpop.permute.xlu0 %409  ;;  %v400_v39 = vpop.permute.xlu1 %399 }
  0x98   : > { %v365_v41 = vpop.permute.xlu2 %364 }
  0x9e   : > { %v415_v36 = vpop.permute.xlu0 %414  ;;  %v405_v42 = vpop.permute.xlu1 %404 }
  0xa0   : > { %v340_v46 = vpop.permute.xlu2 %339 }
  0xa6   : > { %v380_v38 = vpop.permute.xlu0 %379  ;;  %v385_v47 = vpop.permute.xlu1 %384 }
  0xad   : > { %v504_v43 = vpop.f32.mrf.mxu0 }
  0xae   : > { %v375_v40 = vpop.permute.xlu0 %374  ;;  %v505_v48 = vadd.f32 %v504_v43, %v340_v46  ;;  %v360_v26 = vpop.permute.xlu1 %359 }
  0xb0   : > { %v544_v55 = vmax.f32 %v505_v48, 0.0  ;;  %v560_v48 = vld [vmem:[%s1212_s3] sm:$0xf] }
  0xb3   : > { %v524_v44 = vpop.f32.mrf.mxu3 }
  0xb4   : > { %v525_v49 = vadd.f32 %v524_v44, %v380_v38  ;;  %v845_v44 = vld [vmem:[%s1213_s4 + $0x18] sm:$0xff] }
  0xb5   : > { %v506_v51 = vpop.f32.mrf.mxu0 }
  0xb6   : > { %v1138_v45 = vpop.permute.xlu0 %349  ;;  %v552_v56 = vmax.f32 %v525_v49, 0.0  ;;  %v842_v49 = vld [vmem:[%s1213_s4] sm:$0xff] }
  0xbb   : > { %v526_v50 = vpop.f32.mrf.mxu3 }
  0xbc   : > { %v527_v52 = vadd.f32 %v526_v50, %v385_v47  ;;  %v843_v47 = vld [vmem:[%s1213_s4 + $0x8] sm:$0xff] }
  0xbd   : > { %v509_v63 = vpop.f32.mrf.mxu0 }
  0xbe   : > { %v345_v53 = vpop.permute.xlu0 %344  ;;  %v553_v57 = vmax.f32 %v527_v52, 0.0  ;;  %v510_v38 = vadd.f32 %v509_v63, %v1138_v45  ;;  %v844_v45 = vld [vmem:[%s1213_s4 + $0x10] sm:$0xff] }
  0xbf   : > { %v507_v54 = vadd.f32 %v506_v51, %v345_v53 }
  0xc0   : > { %v565_v59 = vpack.c.bf16 %v553_v57, %v552_v56 }
  0xc1   : > { %v545_v58 = vmax.f32 %v507_v54, 0.0  ;;  %v897_v54 = vld [vmem:[%s1214_s5] ss:$0 sm:$0xff] }
  0xc3   : > { %v1140_v60 = vpack.c.bf16 %v545_v58, %v544_v55  ;;  %v529_v61 = vpop.f32.mrf.mxu3 }
  0xc4   : > { %v530_v18 = vadd.f32 %v529_v61, %v390_v33  ;;  %v848_v33 = vld [vmem:[%s1213_s4 + $0x30] sm:$0xff] }
  0xc5   : > { %v511_v2 = vpop.f32.mrf.mxu0  ;;  %653 = vmatpush.bf16.msra.mxu2 %v848_v33 }
  0xc6   : > { %v554_v21 = vmax.f32 %v530_v18, 0.0 }
  0xcb   : > { %v531_v62 = vpop.f32.mrf.mxu3 }
  0xcc   : > { %v532_v16 = vadd.f32 %v531_v62, %v395_v35 }
  0xcd   : > { %v514_v4 = vpop.f32.mrf.mxu0 }
  0xce   : > { %v555_v20 = vmax.f32 %v532_v16, 0.0  ;;  %v515_v30 = vadd.f32 %v514_v4, %v360_v26 }
  0xd0   : > { %v566_v22 = vpack.c.bf16 %v555_v20, %v554_v21  ;;  %v548_v35 = vmax.f32 %v515_v30, 0.0 }
  0xd3   : > { %v534_v0 = vpop.f32.mrf.mxu3 }
  0xd4   : > { %v535_v13 = vadd.f32 %v534_v0, %v400_v39 }
  0xd5   : > { %v516_v12 = vpop.f32.mrf.mxu0 }
  0xd6   : > { %v556_v15 = vmax.f32 %v535_v13, 0.0  ;;  %v517_v29 = vadd.f32 %v516_v12, %v365_v41  ;;  %v846_v41 = vld [vmem:[%s1213_s4 + $0x20] sm:$0xff] }
  0xdb   : > { %v536_v1 = vpop.f32.mrf.mxu3 }
  0xdc   : > { %v537_v10 = vadd.f32 %v536_v1, %v405_v42  ;;  %v546_v42 = vmax.f32 %v510_v38, 0.0 }
  0xdd   : > { %v519_v19 = vpop.f32.mrf.mxu0 }
  0xde   : > { %v557_v14 = vmax.f32 %v537_v10, 0.0  ;;  %v520_v24 = vadd.f32 %v519_v19, %v370_v37  ;;  %v847_v37 = vld [vmem:[%s1213_s4 + $0x28] sm:$0xff] }
  0xdf   : > { %654 = vmatpush.bf16.msra.mxu2 %v847_v37 }
  0xe0   : > { %v567_v17 = vpack.c.bf16 %v557_v14, %v556_v15  ;;  %v550_v27 = vmax.f32 %v520_v24, 0.0 }
  0xe3   : > { %v539_v3 = vpop.f32.mrf.mxu3  ;;  %655 = vmatpush.bf16.msra.mxu2 %v846_v41 }
  0xe4   : > { %v540_v5 = vadd.f32 %v539_v3, %v410_v34  ;;  %v549_v34 = vmax.f32 %v517_v29, 0.0 }
  0xe5   : > { %v521_v23 = vpop.f32.mrf.mxu0 }
  0xe6   : > { %v558_v8 = vmax.f32 %v540_v5, 0.0  ;;  %v522_v25 = vadd.f32 %v521_v23, %v375_v40  ;;  %v563_v40 = vpack.c.bf16 %v549_v34, %v548_v35 }
  0xe7   : > { %656 = vmatpush.bf16.msra.mxu2 %v845_v44 }
  0xe8   : > { %v551_v28 = vmax.f32 %v522_v25, 0.0 }
  0xea   : > { %v564_v31 = vpack.c.bf16 %v551_v28, %v550_v27 }
  0xeb   : > { %v541_v6 = vpop.f32.mrf.mxu3  ;;  %657 = vmatpush.bf16.msra.mxu2 %v844_v45 }
  0xec   : > { %v542_v7 = vadd.f32 %v541_v6, %v415_v36  ;;  %v355_v36 = vpop.permute.xlu1 %354 }
  0xed   : > { %v512_v39 = vadd.f32 %v511_v2, %v355_v36 }
  0xee   : > { %v559_v9 = vmax.f32 %v542_v7, 0.0 }
  0xef   : > { %v547_v43 = vmax.f32 %v512_v39, 0.0  ;;  %658 = vmatpush.bf16.msra.mxu2 %v843_v47 }
  0xf0   : > { %v568_v11 = vpack.c.bf16 %v559_v9, %v558_v8 }
  0xf1   : > { %v562_v46 = vpack.c.bf16 %v547_v43, %v546_v42 }
  0xf2   : > { %569 = vmatpush.bf16.xpose.msra.mxu1 %v568_v11 }
  0xf3   : > { %659 = vmatpush.bf16.msra.mxu2 %v842_v49 }
  0xfa   : > { %570 = vmatpush.bf16.xpose.msra.mxu1 %v567_v17 }
 0x102   : > { %571 = vmatpush.bf16.xpose.msra.mxu1 %v566_v22 }
 0x10a   : > { %572 = vmatpush.bf16.xpose.msra.mxu1 %v565_v59 }
 0x112   : > { %573 = vmatpush.bf16.xpose.msra.mxu1 %v564_v31 }
 0x11a   : > { %574 = vmatpush.bf16.xpose.msra.mxu1 %v563_v40 }
 0x122   : > { %575 = vmatpush.bf16.xpose.msra.mxu1 %v562_v46 }
 0x12a   : > { %576 = vmatpush.bf16.xpose.msra.mxu1 %v1140_v60 }
 0x131   : > { %577 = vmatmul.bf16.vlgmr.msra.gmra.mxu1 %v560_v48 }
 0x1ae   : > { %v578_v50 = vpop.f32.mrf.mxu1 }
 0x1af   : > { %v582_v51 = vmul.f32 0.0625, %v578_v50 }
 0x1b1   : > { %v583_v52 = vpack.c.bf16 %v582_v51, %v582_v51 }
 0x1b3   : > { %660 = vmatmul.bf16.vlgmr.msra.gmra.mxu2 %v583_v52 }
 0x1b6   : > { %v580_v53 = vpop.f32.mrf.mxu1 }
 0x236   : > { %v661_v55 = vpop.f32.mrf.mxu2 }
 0x237   : > { %v662_v56 = vadd.f32 %v897_v54, %v661_v55 }
 0x239   : > { %665 = vst [vmem:[%s300_s28] sm:$0xff] %v662_v56 }
 0x23a   : > { %925 = shalt.err (!%p922_p5)
}
 0x23b   : > { %854 = dma.vmem_to_hbm [thread:$0]  (%p1036_p6), %s680_s29, 128, %s682_s9, %s667_s10  }
 0x23e   : > { %v663_v57 = vpop.f32.mrf.mxu2 }
 0x23f PF: > { %s693_s16 = sand.u32 1, %s948_s21   ;;  %p857_p7 = pnand %p749_p9, %p1040_p8 }
 0x240   : > { %s694_s18 = scalar_lea.sflag [#allocation4], %s693_s16 }
 0x241   : > { %p858_p10 = pneg %p857_p7 }
 0x243   : > { %943 = dma.done.wait (%p858_p10), %s694_s18, 128  }
 0x244   : > { %945 = vsyncadd (%p858_p10), %s694_s18, 4294967168  ;;  %p16_p11 = scmp.ge.s32.totalorder %s1021_s27, 4   ;;  %s1218_s21 = smov %s952_s22 }
 0x245   : > { %s1219_s22 = smov %s956_s23  ;;  %s1220_s23 = smov %s1034_s30 }
 0x246   : > { %s1221_s24 = smov %s1021_s27  ;;  %18 = sbr.rel (!%p16_p11) target bundleno = 3 (0x3), region = 125 }
 0x24b   :  { %700 = vsyncpa [#allocation4], 1 }
 0x24c   :  { %702 = vsyncpa [#allocation4 + $0x1], 1 }

</bundles_post_ra>
